<compile_context>
chip_gen: v7x
topology: tpu7x:2x2x1
jax: 0.10.0
libtpu: 0.0.40
codegen_flags: <defaults>
</compile_context>

<pallas_src>
import jax
import jax.numpy as jnp
from jax.experimental import pallas as pl
from jax.experimental.pallas import tpu as pltpu


def mlp_kernel(x_ref, w1_ref, b1_ref, w2_ref, b2_ref,
               w3_ref, b3_ref, w4_ref, b4_ref, o_ref):
    # x_ref: (27, TB) -- features on sublanes, batch on lanes.  Math in f32.
    x = x_ref[...].astype(jnp.float32)

    h = jnp.dot(w1_ref[...], x, preferred_element_type=jnp.float32) + b1_ref[...]
    h = jnp.maximum(h, 0.0)                                   # (10, TB)

    h = jnp.dot(w2_ref[...], h, preferred_element_type=jnp.float32) + b2_ref[...]
    h = jnp.maximum(h, 0.0)                                   # (10, TB)

    h = jnp.dot(w3_ref[...], h, preferred_element_type=jnp.float32) + b3_ref[...]
    h = jnp.maximum(h, 0.0)                                   # (10, TB)

    logits = jnp.dot(w4_ref[...], h, preferred_element_type=jnp.float32) + b4_ref[...]  # (8, TB)

    # softmax over the 8 action logits (sublane axis) == torch.softmax(dim=-1).
    # Exact divide: the kernel is DMA-bound, the approx reciprocal gains nothing.
    m = jnp.max(logits, axis=0, keepdims=True)
    e = jnp.exp(logits - m)
    o_ref[...] = (e / jnp.sum(e, axis=0, keepdims=True)).astype(o_ref.dtype)


def forward_nn_brain(x_fm, params, *, tb=16384):
    """Forward_NN_brain forward pass.

    x_fm:   (27, B) feature-major observations (f32 or bf16).
    params: PyTorch-layout weights (out, in) f32, biases (out, 1) f32.
    Returns (8, B) softmax action probabilities in x_fm.dtype.
    """
    F, B = x_fm.shape
    assert F == 27, "expected 25 surrounding cells + [energy, age]"

    # Lane-dense batch tile (multiple of 128).  Clamp so small batches are not
    # over-padded, and so that whenever B > 128 the grid has >= 2 steps and the
    # "parallel" batch axis can use both TensorCores on v7x.
    nb = pl.cdiv(B, 128)                                    # 128-lane groups
    max_tb = 128 * pl.cdiv(nb, 2) if nb >= 2 else 128
    tb = min(128 * max(1, tb // 128), max_tb)
    bp = tb * pl.cdiv(B, tb)
    n_tiles = bp // tb

    if bp != B:   # no-op when the engine buckets B (see NOTE above)
        x_fm = jnp.pad(x_fm, ((0, 0), (0, bp - B)))

    io_bytes = jnp.dtype(x_fm.dtype).itemsize
    n_params = 27 * 10 + 10 * 10 + 10 * 10 + 10 * 8 + 38
    cost = pl.CostEstimate(
        flops=2 * bp * (27 * 10 + 10 * 10 + 10 * 10 + 10 * 8),
        transcendentals=bp * 8,                              # 8 exp per column
        bytes_accessed=bp * (27 + 8) * io_bytes + 4 * n_params,
    )

    resident = lambda shape: pl.BlockSpec(shape, lambda i: (0, 0))  # fetched once

    out = pl.pallas_call(
        mlp_kernel,
        out_shape=jax.ShapeDtypeStruct((8, bp), x_fm.dtype),
        grid_spec=pltpu.PrefetchScalarGridSpec(
            num_scalar_prefetch=0,
            grid=(n_tiles,),
            in_specs=[
                pl.BlockSpec((27, tb), lambda i: (0, i)),    # x: pipelined over batch
                resident((10, 27)), resident((10, 1)),       # W1, b1
                resident((10, 10)), resident((10, 1)),       # W2, b2
                resident((10, 10)), resident((10, 1)),       # W3, b3
                resident((8, 10)),  resident((8, 1)),        # W4, b4
            ],
            out_specs=pl.BlockSpec((8, tb), lambda i: (0, i)),
        ),
        compiler_params=pltpu.CompilerParams(
            dimension_semantics=("parallel",),               # shard batch across TCs (v7x)
            vmem_limit_bytes=32 * 1024 * 1024,               # safe on v5e/v6e/v7x
        ),
        cost_estimate=cost,
    )(x_fm,
      params["w1"], params["b1"],
      params["w2"], params["b2"],
      params["w3"], params["b3"],
      params["w4"], params["b4"])

    return out if bp == B else out[:, :B]


def kaiming_uniform(key, fan_out, fan_in):
    # torch.nn.init.kaiming_uniform_(w, a=0, mode='fan_in', nonlinearity='relu')
    # bound = sqrt(2) * sqrt(3 / fan_in) = sqrt(6 / fan_in); PyTorch (out, in) layout.
    bound = (6.0 / fan_in) ** 0.5
    return jax.random.uniform(key, (fan_out, fan_in), jnp.float32, -bound, bound)


def init_params(key):
    # Matches generate_random_genome(): kaiming_uniform(relu) weights, zero biases.
    k1, k2, k3, k4 = jax.random.split(key, 4)
    return {
        "w1": kaiming_uniform(k1, 10, 27), "b1": jnp.zeros((10, 1), jnp.float32),
        "w2": kaiming_uniform(k2, 10, 10), "b2": jnp.zeros((10, 1), jnp.float32),
        "w3": kaiming_uniform(k3, 10, 10), "b3": jnp.zeros((10, 1), jnp.float32),
        "w4": kaiming_uniform(k4, 8, 10),  "b4": jnp.zeros((8, 1), jnp.float32),
    }


def forward_ref(x_fm, p):
    # Pure-JAX reference in the same feature-major layout (f32 input).
    h = jnp.maximum(p["w1"] @ x_fm + p["b1"], 0.0)
    h = jnp.maximum(p["w2"] @ h + p["b2"], 0.0)
    h = jnp.maximum(p["w3"] @ h + p["b3"], 0.0)
    return jax.nn.softmax(p["w4"] @ h + p["b4"], axis=0)


if __name__ == "__main__":
    key = jax.random.PRNGKey(0)
    pkey, xkey = jax.random.split(key)
    params = init_params(pkey)

    # 512 agents; feature-major observations (27, B): 25 flattened surrounding
    # cell codes plus [energy, age].  512 lanes = 4 x 128 -> the v7x-aware clamp
    # picks tb=256 and a 2-step "parallel" batch grid with zero padding.
    B = 512
    x_fm = jax.random.uniform(xkey, (27, B), jnp.float32, -1.0, 3.0)

    # ---- f32 I/O path: exact softmax normalization -----------------------
    out = jax.block_until_ready(forward_nn_brain(x_fm, params))
    ref = forward_ref(x_fm, params)
    assert out.shape == (8, B)
    assert jnp.allclose(jnp.sum(out, axis=0), 1.0, atol=1e-5)          # exact divide
    # Loose value tolerance only because MXU default matmul precision may
    # differ between the Mosaic kernel and the XLA reference.
    assert jnp.allclose(out, ref, atol=2e-2, rtol=2e-2)

    # ---- bf16 I/O path (halves HBM traffic on this bandwidth-bound kernel) ----
    x_bf = x_fm.astype(jnp.bfloat16)
    out_bf = jax.block_until_ready(forward_nn_brain(x_bf, params))
    ref_bf = forward_ref(x_bf.astype(jnp.float32), params)             # same rounded inputs
    assert out_bf.dtype == jnp.bfloat16
    out_bf32 = out_bf.astype(jnp.float32)
    assert jnp.allclose(jnp.sum(out_bf32, axis=0), 1.0, atol=2e-2)     # bf16 output rounding
    assert jnp.allclose(out_bf32, ref_bf, atol=2e-2, rtol=5e-2)

    print("KERNEL_OK")
</pallas_src>

<mosaic_0001>
module attributes {stable_mosaic.version = 11 : i64} {
  func.func @mlp_kernel(%arg0: i32, %arg1: memref<27x256xf32, #tpu.memory_space<vmem>>, %arg2: memref<10x27xf32, #tpu.memory_space<vmem>>, %arg3: memref<10x1xf32, #tpu.memory_space<vmem>>, %arg4: memref<10x10xf32, #tpu.memory_space<vmem>>, %arg5: memref<10x1xf32, #tpu.memory_space<vmem>>, %arg6: memref<10x10xf32, #tpu.memory_space<vmem>>, %arg7: memref<10x1xf32, #tpu.memory_space<vmem>>, %arg8: memref<8x10xf32, #tpu.memory_space<vmem>>, %arg9: memref<8x1xf32, #tpu.memory_space<vmem>>, %arg10: memref<8x256xf32, #tpu.memory_space<vmem>>) attributes {dimension_semantics = [#tpu.dimension_semantics<parallel>], iteration_bounds = array<i64: 2>, scalar_prefetch = 0 : i64, scratch_operands = 0 : i64, tpu.core_type = #tpu.core_type<tc>, window_params = [{transform_indices = @transform_0, window_bounds = array<i64: 27, 256>}, {pipeline_mode = #tpu.pipeline_mode<synchronous>, transform_indices = @transform_1, window_bounds = array<i64: 10, 27>}, {pipeline_mode = #tpu.pipeline_mode<synchronous>, transform_indices = @transform_2, window_bounds = array<i64: 10, 1>}, {pipeline_mode = #tpu.pipeline_mode<synchronous>, transform_indices = @transform_3, window_bounds = array<i64: 10, 10>}, {pipeline_mode = #tpu.pipeline_mode<synchronous>, transform_indices = @transform_4, window_bounds = array<i64: 10, 1>}, {pipeline_mode = #tpu.pipeline_mode<synchronous>, transform_indices = @transform_5, window_bounds = array<i64: 10, 10>}, {pipeline_mode = #tpu.pipeline_mode<synchronous>, transform_indices = @transform_6, window_bounds = array<i64: 10, 1>}, {pipeline_mode = #tpu.pipeline_mode<synchronous>, transform_indices = @transform_7, window_bounds = array<i64: 8, 10>}, {pipeline_mode = #tpu.pipeline_mode<synchronous>, transform_indices = @transform_8, window_bounds = array<i64: 8, 1>}, {transform_indices = @transform_9, window_bounds = array<i64: 8, 256>}]} {
    %c0 = arith.constant 0 : index
    %c0_0 = arith.constant 0 : index
    %0 = vector.load %arg1[%c0, %c0_0] : memref<27x256xf32, #tpu.memory_space<vmem>>, vector<27x256xf32>
    %c0_1 = arith.constant 0 : index
    %c0_2 = arith.constant 0 : index
    %1 = vector.load %arg2[%c0_1, %c0_2] : memref<10x27xf32, #tpu.memory_space<vmem>>, vector<10x27xf32>
    %cst = arith.constant dense<0.000000e+00> : vector<10x256xf32>
    %2 = tpu.matmul %1, %0, %cst {dimension_numbers = #tpu.dot_dimension_numbers<[1], [0], [0], [1], [0, 0, 1, 1], [], []>} : vector<10x27xf32>, vector<27x256xf32>, vector<10x256xf32> -> vector<10x256xf32>
    %c0_3 = arith.constant 0 : index
    %c0_4 = arith.constant 0 : index
    %3 = vector.load %arg3[%c0_3, %c0_4] : memref<10x1xf32, #tpu.memory_space<vmem>>, vector<10x1xf32>
    %4 = vector.broadcast %3 : vector<10x1xf32> to vector<10x256xf32>
    %5 = arith.addf %2, %4 : vector<10x256xf32>
    %cst_5 = arith.constant 0.000000e+00 : f32
    %6 = vector.broadcast %cst_5 : f32 to vector<10x256xf32>
    %7 = arith.maximumf %5, %6 : vector<10x256xf32>
    %c0_6 = arith.constant 0 : index
    %c0_7 = arith.constant 0 : index
    %8 = vector.load %arg4[%c0_6, %c0_7] : memref<10x10xf32, #tpu.memory_space<vmem>>, vector<10x10xf32>
    %cst_8 = arith.constant dense<0.000000e+00> : vector<10x256xf32>
    %9 = tpu.matmul %8, %7, %cst_8 {dimension_numbers = #tpu.dot_dimension_numbers<[1], [0], [0], [1], [0, 0, 1, 1], [], []>} : vector<10x10xf32>, vector<10x256xf32>, vector<10x256xf32> -> vector<10x256xf32>
    %c0_9 = arith.constant 0 : index
    %c0_10 = arith.constant 0 : index
    %10 = vector.load %arg5[%c0_9, %c0_10] : memref<10x1xf32, #tpu.memory_space<vmem>>, vector<10x1xf32>
    %11 = vector.broadcast %10 : vector<10x1xf32> to vector<10x256xf32>
    %12 = arith.addf %9, %11 : vector<10x256xf32>
    %cst_11 = arith.constant 0.000000e+00 : f32
    %13 = vector.broadcast %cst_11 : f32 to vector<10x256xf32>
    %14 = arith.maximumf %12, %13 : vector<10x256xf32>
    %c0_12 = arith.constant 0 : index
    %c0_13 = arith.constant 0 : index
    %15 = vector.load %arg6[%c0_12, %c0_13] : memref<10x10xf32, #tpu.memory_space<vmem>>, vector<10x10xf32>
    %cst_14 = arith.constant dense<0.000000e+00> : vector<10x256xf32>
    %16 = tpu.matmul %15, %14, %cst_14 {dimension_numbers = #tpu.dot_dimension_numbers<[1], [0], [0], [1], [0, 0, 1, 1], [], []>} : vector<10x10xf32>, vector<10x256xf32>, vector<10x256xf32> -> vector<10x256xf32>
    %c0_15 = arith.constant 0 : index
    %c0_16 = arith.constant 0 : index
    %17 = vector.load %arg7[%c0_15, %c0_16] : memref<10x1xf32, #tpu.memory_space<vmem>>, vector<10x1xf32>
    %18 = vector.broadcast %17 : vector<10x1xf32> to vector<10x256xf32>
    %19 = arith.addf %16, %18 : vector<10x256xf32>
    %cst_17 = arith.constant 0.000000e+00 : f32
    %20 = vector.broadcast %cst_17 : f32 to vector<10x256xf32>
    %21 = arith.maximumf %19, %20 : vector<10x256xf32>
    %c0_18 = arith.constant 0 : index
    %c0_19 = arith.constant 0 : index
    %22 = vector.load %arg8[%c0_18, %c0_19] : memref<8x10xf32, #tpu.memory_space<vmem>>, vector<8x10xf32>
    %cst_20 = arith.constant dense<0.000000e+00> : vector<8x256xf32>
    %23 = tpu.matmul %22, %21, %cst_20 {dimension_numbers = #tpu.dot_dimension_numbers<[1], [0], [0], [1], [0, 0, 1, 1], [], []>} : vector<8x10xf32>, vector<10x256xf32>, vector<8x256xf32> -> vector<8x256xf32>
    %c0_21 = arith.constant 0 : index
    %c0_22 = arith.constant 0 : index
    %24 = vector.load %arg9[%c0_21, %c0_22] : memref<8x1xf32, #tpu.memory_space<vmem>>, vector<8x1xf32>
    %25 = vector.broadcast %24 : vector<8x1xf32> to vector<8x256xf32>
    %26 = arith.addf %23, %25 : vector<8x256xf32>
    %cst_23 = arith.constant dense<0xFF800000> : vector<256xf32>
    %27 = vector.multi_reduction <maximumf>, %26, %cst_23 [0] : vector<8x256xf32> to vector<256xf32>
    %28 = vector.shape_cast %27 : vector<256xf32> to vector<1x256xf32>
    %29 = vector.broadcast %28 : vector<1x256xf32> to vector<8x256xf32>
    %30 = arith.subf %26, %29 : vector<8x256xf32>
    %31 = math.exp %30 : vector<8x256xf32>
    %cst_24 = arith.constant dense<0.000000e+00> : vector<256xf32>
    %32 = vector.multi_reduction <add>, %31, %cst_24 [0] : vector<8x256xf32> to vector<256xf32>
    %33 = vector.shape_cast %32 : vector<256xf32> to vector<1x256xf32>
    %34 = vector.broadcast %33 : vector<1x256xf32> to vector<8x256xf32>
    %35 = arith.divf %31, %34 : vector<8x256xf32>
    %c0_25 = arith.constant 0 : index
    %c0_26 = arith.constant 0 : index
    %36 = vector.load %arg10[%c0_25, %c0_26] : memref<8x256xf32, #tpu.memory_space<vmem>>, vector<8x256xf32>
    tpu.vector_store %arg10[%c0_25, %c0_26], %35 {strides = array<i32>} : memref<8x256xf32, #tpu.memory_space<vmem>>, vector<8x256xf32>,
    return
  }
  func.func @transform_0(%arg0: i32) -> (i32, i32) {
    %c0_i32 = arith.constant 0 : i32
    %c0_i32_0 = arith.constant 0 : i32
    return %c0_i32, %arg0 : i32, i32
  }
  func.func @transform_1(%arg0: i32) -> (i32, i32) {
    %c0_i32 = arith.constant 0 : i32
    %c0_i32_0 = arith.constant 0 : i32
    %c0_i32_1 = arith.constant 0 : i32
    return %c0_i32, %c0_i32_0 : i32, i32
  }
  func.func @transform_2(%arg0: i32) -> (i32, i32) {
    %c0_i32 = arith.constant 0 : i32
    %c0_i32_0 = arith.constant 0 : i32
    %c0_i32_1 = arith.constant 0 : i32
    return %c0_i32, %c0_i32_0 : i32, i32
  }
  func.func @transform_3(%arg0: i32) -> (i32, i32) {
    %c0_i32 = arith.constant 0 : i32
    %c0_i32_0 = arith.constant 0 : i32
    %c0_i32_1 = arith.constant 0 : i32
    return %c0_i32, %c0_i32_0 : i32, i32
  }
  func.func @transform_4(%arg0: i32) -> (i32, i32) {
    %c0_i32 = arith.constant 0 : i32
    %c0_i32_0 = arith.constant 0 : i32
    %c0_i32_1 = arith.constant 0 : i32
    return %c0_i32, %c0_i32_0 : i32, i32
  }
  func.func @transform_5(%arg0: i32) -> (i32, i32) {
    %c0_i32 = arith.constant 0 : i32
    %c0_i32_0 = arith.constant 0 : i32
    %c0_i32_1 = arith.constant 0 : i32
    return %c0_i32, %c0_i32_0 : i32, i32
  }
  func.func @transform_6(%arg0: i32) -> (i32, i32) {
    %c0_i32 = arith.constant 0 : i32
    %c0_i32_0 = arith.constant 0 : i32
    %c0_i32_1 = arith.constant 0 : i32
    return %c0_i32, %c0_i32_0 : i32, i32
  }
  func.func @transform_7(%arg0: i32) -> (i32, i32) {
    %c0_i32 = arith.constant 0 : i32
    %c0_i32_0 = arith.constant 0 : i32
    %c0_i32_1 = arith.constant 0 : i32
    return %c0_i32, %c0_i32_0 : i32, i32
  }
  func.func @transform_8(%arg0: i32) -> (i32, i32) {
    %c0_i32 = arith.constant 0 : i32
    %c0_i32_0 = arith.constant 0 : i32
    %c0_i32_1 = arith.constant 0 : i32
    return %c0_i32, %c0_i32_0 : i32, i32
  }
  func.func @transform_9(%arg0: i32) -> (i32, i32) {
    %c0_i32 = arith.constant 0 : i32
    %c0_i32_0 = arith.constant 0 : i32
    return %c0_i32, %arg0 : i32, i32
  }
}

</mosaic_0001>

<bundles_post_ra>
// kernel: tpu_custom_call.1
= control target key start
LH: loop header
LB: loop body
LE: loop exit
PB: predicated region body
PF: predicated region fallthrough
CT: control target
= control target key end

     0   :  { %14 = vsyncpa [#allocation3], 0  ;;  %s1406_s0 = inlined_call_operand.hbm [shape: f32[27,512], index: 0, kind: input, shape index: {}]   ;;  %s1407_s1 = inlined_call_operand.vmem [shape: f32[10,27], index: 1, kind: input, shape index: {}]   ;;  %s1408_s2 = inlined_call_operand.vmem [shape: f32[10,1], index: 2, kind: input, shape index: {}]   ;;  %s1409_s3 = inlined_call_operand.vmem [shape: f32[10,10], index: 3, kind: input, shape index: {}]   ;;  %s1410_s4 = inlined_call_operand.vmem [shape: f32[10,1], index: 4, kind: input, shape index: {}]   ;;  %s1411_s5 = inlined_call_operand.vmem [shape: f32[10,10], index: 5, kind: input, shape index: {}]   ;;  %s1412_s6 = inlined_call_operand.vmem [shape: f32[10,1], index: 6, kind: input, shape index: {}]   ;;  %s1413_s7 = inlined_call_operand.vmem [shape: f32[8,10], index: 7, kind: input, shape index: {}]   ;;  %s1414_s8 = inlined_call_operand.vmem [shape: f32[8,1], index: 8, kind: input, shape index: {}]   ;;  %s1415_s9 = inlined_call_operand.hbm [shape: f32[8,512], index: 9, kind: output, shape index: {}]  }
   0x1   :  { %16 = vsyncpa [#allocation3 + $0x1], 0 }
   0x2   :  { %17 = vsyncpa [#allocation4], 0 }
   0x3   :  { %19 = vsyncpa [#allocation4 + $0x1], 0  ;;  %s1171_s30 = smov 0   ;;  %s1173_s10 = smov 0  }
   0x4   :  { %s1175_s11 = smov 0   ;;  %s1177_s12 = smov 0  }
   0x5 LB: > { %s1192_s13 = sadd.s32 4294967295, %s1111_s12   ;;  %s894_s14 = sadd.s32 4294967294, %s1111_s12   ;;  %s1111_s12 = sphi %s1177_s12, %s1431_s12   ;;  %s1107_s11 = sphi %s1175_s11, %s1430_s11   ;;  %s1103_s10 = sphi %s1173_s10, %s1429_s10   ;;  %s1099_s30 = sphi %s1171_s30, %s1428_s30  }
   0x6   : > { %s1196_s15 = sadd.s32 1, %s1111_s12   ;;  %s32_s16 = sadd.s32 1, %s1107_s11 }
   0x7   : > { %s29_s17 = ssub.s32 %s1111_s12, %s1196_s15  ;;  %p39_p0 = scmp.ne.s32.totalorder %s1107_s11, %s1103_s10 }
   0x8   : > { %p30_p1 = scmp.eq.s32.totalorder %s29_s17, 0  ;;  %p40_p2 = scmp.eq.s32.totalorder %s1111_s12, 0 }
   0x9   : > { %p45_p3 = scmp.ne.s32.totalorder %s1103_s10, %s1099_s30  ;;  %p46_p4 = scmp.eq.s32.totalorder %s1192_s13, 0 }
   0xa   : > { %s1208_s18 = scalar_select %p30_p1, %s1107_s11, %s32_s16  }
   0xb   : > { %p1210_p5 = por %p40_p2, %p39_p0  ;;  %p1214_p6 = por %p46_p4, %p45_p3 }
   0xc   : > { %p237_p7 = scmp.eq.s32.totalorder %s1192_s13, 1  ;;  %p243_p8 = scmp.eq.s32.totalorder %s894_s14, 1 }
   0xd   : > { %p965_p10 = scmp.lt.s32.totalorder %s1111_s12, 2  ;;  %s287_s23 = sand.u32 1, %s1107_s11  }
   0xe   : > { %p1221_p11 = por %p237_p7, %p39_p0  ;;  %p1225_p12 = por %p243_p8, %p45_p3 }
   0xf   : > { %s923_s24 = sshll.u32 %s1111_s12, 8  ;;  %s897_s25 = sshll.u32 %s287_s23, 6 }
  0x10   : > { %s1419_s21 = scalar_select %p1221_p11, 1, 0 }
  0x11   : > { %s1420_s22 = scalar_select %p1225_p12, 1, 0 }
  0x12   : > { %s1234_s28 = scalar_lea.hbm %s1406_s0, %s923_s24  ;;  %s291_s29 = scalar_lea.vmem [#allocation2], %s897_s25 }
  0x13   : > { %s298_s14 = sshll.u32 %s291_s29, 4  ;;  %p1238_p13 = pnand %p965_p10, %p1210_p5  ;;  %s1242_s14 = int_to_ptr.vmem [resolvable:$true] %s298_s14 }
  0x14   : > { %s1245_s17 = scalar_lea.sflag [#allocation3], %s287_s23  ;;  %s1015_s24 = scalar_lea.hbm %s1234_s28, 1024 }
  0x15   : > { %p1016_p1 = scmp.ne.s32.totalorder %s1234_s28, %s1015_s24  ;;  %p1017_p2 = pneg %p1238_p13 }
  0x16   : > { %s1020_s26 = scalar_lea.hbm %s1406_s0, 2048  ;;  %p1021_p5 = scmp.lt.u32.totalorder %s1234_s28, %s1406_s0 }
  0x17   : > { %p1018_p3 = pnand %p1017_p2, %p1016_p1  ;;  %p1022_p7 = scmp.lt.u32.totalorder %s1020_s26, %s1015_s24 }
  0x18   : > { %p1024_p10 = scmp.lt.u32.totalorder %s1015_s24, %s1234_s28 }
  0x19   : > { %p1019_p4 = pneg %p1018_p3  ;;  %p1023_p8 = por %p1022_p7, %p1021_p5 }
  0x1b   : > { %p1025_p9 = por %p1024_p10, %p1023_p8 }
  0x1d   : > { %p1026_p0 = pnand %p1025_p9, %p1019_p4 }
  0x1f   : > { %1029 = shalt.err (!%p1026_p0)
}
  0x20   : > { %s1030_s23 = scalar_lea.vmem %s1242_s14, 1024  ;;  %s1113_s19 = smov [#allocation2]  }
  0x21   : > { %p1031_p1 = scmp.ne.s32.totalorder %s1242_s14, %s1030_s23  ;;  %s1035_s25 = sshll.u32 %s1113_s19, 4  ;;  %s1036_s25 = int_to_ptr.vmem [resolvable:$false] %s1035_s25 }
  0x22   : > { %s1037_s27 = scalar_lea.vmem %s1036_s25, 2048  ;;  %p1038_p11 = scmp.lt.s32.totalorder %s1242_s14, %s1036_s25 }
  0x23   : > { %p1033_p3 = pnand %p1031_p1, %p1017_p2  ;;  %p1039_p5 = scmp.lt.s32.totalorder %s1037_s27, %s1030_s23 }
  0x25   : > { %p1034_p12 = pneg %p1033_p3  ;;  %p1040_p7 = por %p1039_p5, %p1038_p11 }
  0x27   : > { %p1041_p8 = pnand %p1040_p7, %p1034_p12 }
  0x29   : > { %1044 = shalt.err (!%p1041_p8)
}
  0x2a   : > { %s1114_s24 = smov 512   ;;  %s1115_s26 = smov 256  }
  0x2b   : > { %s1116_s29 = smov 16   ;;  %p306_p9 = scmp.lt.s32.totalorder %s1111_s12, 3 }
  0x2c   : > { %960 = dma.hbm_to_vmem [thread:$0]  (!%p1238_p13), %s1234_s28, 1024, %s1242_s14, %s1245_s17, %s1114_s24, %s1115_s26, %s1116_s29  }
  0x2d   : > { %p1422_p0 = scmp.ge.s32.totalorder %s1111_s12, 1 }
  0x2f   : > { %p307_p2 = pnand %p1422_p0, %p306_p9 }
  0x30   : > { %s1277_s23 = sand.u32 (!%p307_p2), 1, %s1103_s10  }
  0x31   : > { %310 = sbr.rel (%p307_p2) target bundleno = 1030 (0x406), region = 56  ;;  %s901_s19 = sshll.u32 (!%p307_p2), %s1277_s23, 6 }
  0x32   : > { %s313_s25 = scalar_lea.sflag (!%p307_p2), [#allocation3], %s1277_s23  ;;  %s316_s27 = scalar_lea.vmem (!%p307_p2), [#allocation2], %s901_s19 }
  0x38   : > { %1090 = dma.done.wait (%p1214_p6), %s313_s25, 1024  }
  0x39   : > { %1092 = vsyncadd (%p1214_p6), %s313_s25, 4294966272  ;;  %v1117_v0 = vmov 0.0   ;;  %v1118_v1 = vmov 0   ;;  %vm382_vm0 = vcmask 1042432   ;;  %v354_v2 = vld [vmem:[%s316_s27 + $0x8] sm:$0xff]  ;;  %v356_v3 = vld [vmem:[%s316_s27 + $0x18] sm:$0xff] }
  0x3a   : > { %453 = vmatprep.mubr.f32.mxu0 %v1117_v0  ;;  %562 = vmatprep.mubr.f32.mxu1 %v1117_v0  ;;  %v353_v4 = vld [vmem:[%s316_s27] sm:$0xff]  ;;  %v925_v5 = vpack.c.bf16 %v356_v3, %v354_v2  ;;  %v355_v6 = vld [vmem:[%s316_s27 + $0x10] sm:$0xff]  ;;  %v358_v7 = vld [vmem:[%s316_s27 + $0x28] sm:$0xff]  ;;  %vm1119_vm1 = vmmov 1   ;;  %vm375_vm3 = vcmask 220160   ;;  %vm491_vm4 = vcmask 1041408  }
  0x3b   : > { %1005 = vset.pattern.permute.xlu0 %v1118_v1  ;;  %1006 = vset.pattern.permute.xlu1 %v1118_v1  ;;  %v360_v8 = vld [vmem:[%s316_s27 + $0x38] sm:$0x7]  ;;  %v927_v9 = vpack.c.bf16 %v355_v6, %v353_v4  ;;  %vm930_vm2 = vmpackc.low %vm382_vm0, %vm1119_vm1  ;;  %v357_v11 = vld [vmem:[%s316_s27 + $0x20] sm:$0xff]  ;;  %vm484_vm6 = vcmask 80896   ;;  %s902_s26 = sshll.u32 %s1277_s23, 4  ;;  %s924_s29 = sshll.u32 %s1192_s13, 8 }
  0x3c   : > { %v929_v10 = vpack.c.bf16 %v360_v8, %v358_v7  ;;  %v359_v12 = vld [vmem:[%s316_s27 + $0x30] sm:$0x7]  ;;  %926 = vmatprep.subr.bf16.mxu0 %v925_v5  ;;  %v363_v13 = vld [vmem:[%s1408_s2] sm:$0xff]  ;;  %v364_v15 = vld [vmem:[%s1408_s2 + $0x8] sm:$0x3]  ;;  %s350_s19 = scalar_lea.vmem [#allocation5], %s902_s26  ;;  %s1362_s28 = scalar_lea.hbm %s1415_s9, %s924_s29 }
  0x3d   : > { %928 = vmatpush1.bf16.msra.mxu0 %v927_v9  ;;  %v932_v14 = vpack.c.bf16 %v359_v12, %v357_v11  ;;  %367 = vperm.xlu0 %1005, %v363_v13   ;;  %v361_v16 = vld [vmem:[%s1407_s1] sm:$0xff]  ;;  %v362_v18 = vld [vmem:[%s1407_s1 + $0x8] sm:$0x3]  ;;  %vm1318_vm5 = vmpackc.low %vm491_vm4, %vm1119_vm1  ;;  %s824_s25 = sshll.u32 %s350_s19, 4  ;;  %s810_s14 = scalar_lea.sflag [#allocation4], %s1277_s23  ;;  %s1364_s25 = int_to_ptr.vmem [resolvable:$true] %s824_s25 }
  0x3e   : > { %931 = vmatprep.subr.msk.bf16.mxu0 %vm930_vm2, %v929_v10  ;;  %v581_v17 = vld [vmem:[%s1412_s6] sm:$0xff]  ;;  %v473_v21 = vld [vmem:[%s1410_s4 + $0x8] sm:$0x3]  ;;  %s1045_s13 = scalar_lea.vmem %s1364_s25, 256  ;;  %p1425_p11 = scmp.ne.s32.totalorder %s1419_s21, 0 }
  0x3f   : > { %v687_v19 = vld [vmem:[%s1414_s8] sm:$0xff]  ;;  %v582_v22 = vld [vmem:[%s1412_s6 + $0x8] sm:$0x3]  ;;  %p1046_p6 = scmp.ne.s32.totalorder %s1364_s25, %s1045_s13  ;;  %s1120_s16 = smov [#allocation5]  }
  0x40   : > { %v472_v20 = vld [vmem:[%s1410_s4] sm:$0xff]  ;;  %v471_v41 = vld [vmem:[%s1409_s3 + $0x8] sm:$0x3]  ;;  %s1049_s17 = sshll.u32 %s1120_s16, 4  ;;  %s1050_s17 = int_to_ptr.vmem [resolvable:$false] %s1049_s17 }
  0x41   : > { %934 = vmatpush1.bf16.msk.msra.mxu0 %vm930_vm2, %v932_v14  ;;  %372 = vperm.xlu0 %1005, %v364_v15   ;;  %v470_v40 = vld [vmem:[%s1409_s3] sm:$0xff]  ;;  %v580_v59 = vld [vmem:[%s1411_s5 + $0x8] sm:$0x3]  ;;  %p1047_p12 = pnand %p1046_p6, %p1425_p11  ;;  %s1051_s24 = scalar_lea.vmem %s1050_s17, 512 }
  0x42   : > { %476 = vperm.xlu1 %1006, %v472_v20   ;;  %v579_v58 = vld [vmem:[%s1411_s5] sm:$0xff]  ;;  %p1052_p4 = scmp.lt.s32.totalorder %s1364_s25, %s1050_s17  ;;  %p1053_p10 = scmp.lt.s32.totalorder %s1051_s24, %s1045_s13 }
  0x43   : > { %v686_v12 = vld [vmem:[%s1413_s7] sm:$0xff]  ;;  %p1048_p13 = pneg %p1047_p12 }
  0x44   : > { %905 = vmatmul.mubr.msk.f32.vlgmr.msra.gmra.mrb[0].mxu0 %vm375_vm3, %v361_v16  ;;  %p1054_p1 = por %p1053_p10, %p1052_p4 }
  0x45   : > { %459 = vmatprep.mubr.f32.mxu0 %v1117_v0  ;;  %585 = vperm.xlu0 %1005, %v581_v17  }
  0x46   : > { %481 = vperm.xlu1 %1006, %v473_v21   ;;  %p1055_p3 = pnand %p1054_p1, %p1048_p13 }
  0x48   : > { %906 = vmatmul.mubr.msk.f32.gmra.mrb[2].mxu0 %vm375_vm3, %v362_v18 }
  0x49   : > { %690 = vperm.xlu0 %1005, %v687_v19   ;;  %766 = vmatprep.mubr.f32.mxu0 %v1117_v0 }
  0x4a   : > { %590 = vperm.xlu1 %1006, %v582_v22  }
  0xbc   : > { %v368_v23 = vpop.permute.xlu0 %367 }
  0xc0   : > { %v373_v27 = vpop.permute.xlu0 %372 }
  0xc1   : > { %v477_v42 = vpop.permute.xlu1 %476 }
  0xc4   : > { %v586_v62 = vpop.permute.xlu0 %585 }
  0xc5   : > { %v482_v46 = vpop.permute.xlu1 %481 }
  0xc8   : > { %v691_v13 = vpop.permute.xlu0 %690 }
  0xc9   : > { %v591_v1 = vpop.permute.xlu1 %590 }
 0x117   : > { %v455_v24 = vpop.f32.mrb[0].mxu0 }
 0x118   : > { %v457_v25 = vpop.f32.mrb[1].mxu0  ;;  %v456_v26 = vadd.f32 %v455_v24, %v368_v23 }
 0x119   : > { %v458_v28 = vadd.f32 %v457_v25, %v368_v23 }
 0x11a   : > { %v466_v33 = vmax.f32 %v456_v26, 0.0 }
 0x11b   : > { %v461_v29 = vpop.f32.mrb[2].mxu0  ;;  %v467_v35 = vmax.f32 %v458_v28, 0.0 }
 0x11c   : > { %v462_v30 = vadd.f32 %v461_v29, %v373_v27  ;;  %v463_v31 = vpop.f32.mrb[3].mxu0 }
 0x11d   : > { %v464_v32 = vadd.f32 %v463_v31, %v373_v27 }
 0x11e   : > { %v468_v34 = vmax.f32 %v462_v30, 0.0 }
 0x11f   : > { %v469_v36 = vmax.f32 %v464_v32, 0.0 }
 0x120   : > { %v938_v38 = vpack.c.bf16 %v468_v34, %v466_v33 }
 0x121   : > { %v935_v39 = vpack.c.bf16 %v469_v36, %v467_v35 }
 0x123   : > { %937 = vmatprep.subr.msk.bf16.mxu1 %vm1318_vm5, %v935_v39 }
 0x124   : > { %940 = vmatpush1.bf16.msk.msra.mxu1 %vm1318_vm5, %v938_v38 }
 0x127   : > { %909 = vmatmul.mubr.msk.f32.vlgmr.msra.gmra.mrb[0].mxu1 %vm484_vm6, %v470_v40 }
 0x128   : > { %568 = vmatprep.mubr.f32.mxu1 %v1117_v0 }
 0x12b   : > { %910 = vmatmul.mubr.msk.f32.gmra.mrb[2].mxu1 %vm484_vm6, %v471_v41 }
 0x12c   : > { %669 = vmatprep.mubr.f32.mxu1 %v1117_v0 }
 0x1fa   : > { %v564_v43 = vpop.f32.mrb[0].mxu1 }
 0x1fb   : > { %v566_v44 = vpop.f32.mrb[1].mxu1  ;;  %v565_v45 = vadd.f32 %v564_v43, %v477_v42 }
 0x1fc   : > { %v567_v47 = vadd.f32 %v566_v44, %v477_v42 }
 0x1fd   : > { %v575_v52 = vmax.f32 %v565_v45, 0.0 }
 0x1fe   : > { %v570_v48 = vpop.f32.mrb[2].mxu1  ;;  %v576_v54 = vmax.f32 %v567_v47, 0.0 }
 0x1ff   : > { %v571_v49 = vadd.f32 %v570_v48, %v482_v46  ;;  %v572_v50 = vpop.f32.mrb[3].mxu1 }
 0x200   : > { %v573_v51 = vadd.f32 %v572_v50, %v482_v46 }
 0x201   : > { %v577_v53 = vmax.f32 %v571_v49, 0.0 }
 0x202   : > { %v578_v55 = vmax.f32 %v573_v51, 0.0 }
 0x203   : > { %v944_v56 = vpack.c.bf16 %v577_v53, %v575_v52 }
 0x204   : > { %v941_v57 = vpack.c.bf16 %v578_v55, %v576_v54 }
 0x206   : > { %943 = vmatprep.subr.msk.bf16.mxu1 %vm1318_vm5, %v941_v57 }
 0x207   : > { %946 = vmatpush1.bf16.msk.msra.mxu1 %vm1318_vm5, %v944_v56 }
 0x20a   : > { %913 = vmatmul.mubr.msk.f32.vlgmr.msra.gmra.mrb[4].mxu1 %vm484_vm6, %v579_v58 }
 0x20b   : > { %675 = vmatprep.mubr.f32.mxu1 %v1117_v0 }
 0x20e   : > { %914 = vmatmul.mubr.msk.f32.gmra.mrb[6].mxu1 %vm484_vm6, %v580_v59 }
 0x2dd   : > { %v671_v60 = vpop.f32.mrb[4].mxu1 }
 0x2de   : > { %v673_v61 = vpop.f32.mrb[5].mxu1  ;;  %v672_v63 = vadd.f32 %v671_v60, %v586_v62 }
 0x2df   : > { %v674_v2 = vadd.f32 %v673_v61, %v586_v62 }
 0x2e0   : > { %v682_v7 = vmax.f32 %v672_v63, 0.0 }
 0x2e1   : > { %v677_v3 = vpop.f32.mrb[6].mxu1  ;;  %v683_v9 = vmax.f32 %v674_v2, 0.0 }
 0x2e2   : > { %v678_v4 = vadd.f32 %v677_v3, %v591_v1  ;;  %v679_v5 = vpop.f32.mrb[7].mxu1 }
 0x2e3   : > { %v680_v6 = vadd.f32 %v679_v5, %v591_v1 }
 0x2e4   : > { %v684_v8 = vmax.f32 %v678_v4, 0.0 }
 0x2e5   : > { %v685_v0 = vmax.f32 %v680_v6, 0.0 }
 0x2e6   : > { %v950_v10 = vpack.c.bf16 %v684_v8, %v682_v7 }
 0x2e7   : > { %v947_v11 = vpack.c.bf16 %v685_v0, %v683_v9 }
 0x2e9   : > { %949 = vmatprep.subr.msk.bf16.mxu0 %vm1318_vm5, %v947_v11 }
 0x2ea   : > { %952 = vmatpush1.bf16.msk.msra.mxu0 %vm1318_vm5, %v950_v10 }
 0x2ed   : > { %917 = vmatmul.mubr.msk.f32.vlgmr.msra.gmra.mrb[4].mxu0 %vm484_vm6, %v686_v12 }
 0x3c0   : > { %v768_v14 = vpop.f32.mrb[4].mxu0 }
 0x3c1   : > { %v769_v15 = vadd.f32 %v768_v14, %v691_v13  ;;  %v770_v16 = vpop.f32.mrb[5].mxu0 }
 0x3c2   : > { %v771_v17 = vadd.f32 %v770_v16, %v691_v13 }
 0x3c3   : > { %v773_v18 = vrot.slane %v769_v15, 4 }
 0x3c4   : > { %v779_v19 = vrot.slane %v771_v17, 4 }
 0x3c5   : > { %v774_v20 = vmax.f32 %v769_v15, %v773_v18 }
 0x3c6   : > { %v780_v21 = vmax.f32 %v771_v17, %v779_v19 }
 0x3c7   : > { %v775_v22 = vrot.slane %v774_v20, 2 }
 0x3c8   : > { %v781_v23 = vrot.slane %v780_v21, 2 }
 0x3c9   : > { %v776_v24 = vmax.f32 %v774_v20, %v775_v22 }
 0x3ca   : > { %v782_v25 = vmax.f32 %v780_v21, %v781_v23 }
 0x3cb   : > { %v777_v26 = vrot.slane %v776_v24, 1 }
 0x3cc   : > { %v783_v27 = vrot.slane %v782_v25, 1 }
 0x3cd   : > { %v778_v28 = vmax.f32 %v776_v24, %v777_v26 }
 0x3ce   : > { %v784_v29 = vmax.f32 %v782_v25, %v783_v27 }
 0x3cf   : > { %v785_v30 = vsub.f32 %v769_v15, %v778_v28 }
 0x3d0   : > { %v786_v31 = vsub.f32 %v771_v17, %v784_v29 }
 0x3d1   : > { %v787_v32 = vmul.f32 1.442695, %v785_v30 }
 0x3d2   : > { %v789_v33 = vmul.f32 1.442695, %v786_v31 }
 0x3d3   : > { %1007 = vpow2.f32 %v787_v32 }
 0x3d4   : > { %1009 = vpow2.f32 %v789_v33 }
 0x3dd   : > { %v1008_v34 = vpop.eup %1007 }
 0x3de   : > { %v1010_v35 = vpop.eup %1009  ;;  %v791_v36 = vrot.slane %v1008_v34, 4 }
 0x3df   : > { %v797_v37 = vrot.slane %v1010_v35, 4 }
 0x3e0   : > { %v792_v38 = vadd.f32 %v1008_v34, %v791_v36 }
 0x3e1   : > { %v798_v39 = vadd.f32 %v1010_v35, %v797_v37 }
 0x3e2   : > { %v793_v40 = vrot.slane %v792_v38, 2 }
 0x3e3   : > { %v799_v41 = vrot.slane %v798_v39, 2 }
 0x3e4   : > { %v794_v42 = vadd.f32 %v793_v40, %v792_v38 }
 0x3e5   : > { %v800_v43 = vadd.f32 %v799_v41, %v798_v39 }
 0x3e6   : > { %v795_v44 = vrot.slane %v794_v42, 1 }
 0x3e7   : > { %v801_v45 = vrot.slane %v800_v43, 1 }
 0x3e8   : > { %v796_v46 = vadd.f32 %v795_v44, %v794_v42 }
 0x3e9   : > { %v802_v47 = vadd.f32 %v801_v45, %v800_v43 }
 0x3ea   : > { %1011 = vrcp.f32 %v796_v46 }
 0x3eb   : > { %1013 = vrcp.f32 %v802_v47 }
 0x3f4   : > { %v1012_v48 = vpop.eup %1011 }
 0x3f5   : > { %v1014_v49 = vpop.eup %1013  ;;  %v804_v50 = vmul.f32 %v1012_v48, %v1008_v34 }
 0x3f6   : > { %v806_v51 = vmul.f32 %v1014_v49, %v1010_v35 }
 0x3f7   : > { %807 = vst [vmem:[%s350_s19] sm:$0xff] %v804_v50 }
 0x3f8   : > { %808 = vst [vmem:[%s350_s19 + $0x8] sm:$0xff] %v806_v51 }
 0x3f9   : > { %1058 = shalt.err (!%p1055_p3)
}
 0x3fa   : > { %s1059_s23 = scalar_lea.hbm %s1362_s28, 256  ;;  %s1063_s19 = scalar_lea.hbm %s1415_s9, 512 }
 0x3fb   : > { %p1060_p5 = scmp.ne.s32.totalorder %s1362_s28, %s1059_s23  ;;  %p1064_p9 = scmp.lt.u32.totalorder %s1362_s28, %s1415_s9 }
 0x3fc   : > { %p1065_p0 = scmp.lt.u32.totalorder %s1063_s19, %s1059_s23  ;;  %p1067_p6 = scmp.lt.u32.totalorder %s1059_s23, %s1362_s28 }
 0x3fd   : > { %p1061_p7 = pnand %p1060_p5, %p1425_p11 }
 0x3fe   : > { %p1066_p2 = por %p1065_p0, %p1064_p9 }
 0x3ff   : > { %p1062_p8 = pneg %p1061_p7 }
 0x400   : > { %p1068_p12 = por %p1067_p6, %p1066_p2 }
 0x402   : > { %p1069_p13 = pnand %p1068_p12, %p1062_p8 }
 0x404   : > { %1072 = shalt.err (!%p1069_p13)
}
 0x405   : > { %955 = dma.vmem_to_hbm [thread:$0]  (%p1425_p11), %s1364_s25, 256, %s1362_s28, %s810_s14  }
 0x406 PF: > { %s836_s13 = sand.u32 1, %s1099_s30   ;;  %p1426_p4 = scmp.ne.s32.totalorder %s1420_s22, 0 }
 0x407   : > { %p1427_p10 = scmp.ge.s32.totalorder %s1111_s12, 2  ;;  %s837_s16 = scalar_lea.sflag [#allocation4], %s836_s13 }
 0x409   : > { %p962_p1 = pnand %p1427_p10, %p1426_p4 }
 0x40b   : > { %1094 = dma.done.wait (!%p962_p1), %s837_s16, 256  }
 0x40c   : > { %1096 = vsyncadd (!%p962_p1), %s837_s16, 4294967040  ;;  %p22_p3 = scmp.ge.s32.totalorder %s1196_s15, 4   ;;  %s1428_s30 = smov %s1103_s10 }
 0x40d   : > { %s1429_s10 = smov %s1107_s11  ;;  %s1430_s11 = smov %s1208_s18 }
 0x40e   : > { %s1431_s12 = smov %s1196_s15  ;;  %24 = sbr.rel (!%p22_p3) target bundleno = 5 (0x5), region = 101 }
 0x415   :  { %842 = vsyncpa [#allocation3], 1 }
 0x416   :  { %844 = vsyncpa [#allocation3 + $0x1], 1 }
 0x417   :  { %845 = vsyncpa [#allocation4], 1 }
 0x418   :  { %847 = vsyncpa [#allocation4 + $0x1], 1 }

</bundles_post_ra>
